<compile_context>
chip_gen: v7x
topology: tpu7x:2x2x1
jax: 0.10.0
libtpu: 0.0.40
codegen_flags: <defaults>
</compile_context>

<pallas_src>
import functools

import jax
import jax.numpy as jnp
from jax.experimental import pallas as pl
from jax.experimental.pallas import tpu as pltpu


def _round_up(a: int, b: int) -> int:
    return -(-a // b) * b


# ----------------------------------------------------------------------------
# Kernel
# ----------------------------------------------------------------------------
def mlp_kernel(x_ref, w1_ref, b1_ref, w2_ref, b2_ref, o_ref, *,
               hid_chunk, n_chunks, unroll):
    # x_ref:  (TM, F_IN)    f32 (cast to bf16 in-kernel)
    # w1_ref: (F_IN, HID_P) bf16     b1_ref: (1, HID_P)   f32
    # w2_ref: (HID_P, F_OUT_P) bf16  b2_ref: (1, F_OUT_P) f32
    # o_ref:  (TM, F_OUT_P) f32 (accumulator; initialised with b2 broadcast)
    x = x_ref[...].astype(jnp.bfloat16)

    def chunk(c, acc):
        if isinstance(c, int):
            off = c * hid_chunk                       # static offset (unrolled)
        else:
            off = pl.multiple_of(c * hid_chunk, hid_chunk)
        # First matmul (MXU, bf16 operands, f32 accumulate) + bias + ReLU.
        h = jnp.dot(x, w1_ref[:, pl.ds(off, hid_chunk)],
                    preferred_element_type=jnp.float32)
        h = jnp.maximum(h + b1_ref[:, pl.ds(off, hid_chunk)], 0.0)
        # Feed the activated chunk straight into the second MXU matmul
        # (no VMEM round-trip), accumulating in f32.
        return acc + jnp.dot(h.astype(jnp.bfloat16),
                             w2_ref[pl.ds(off, hid_chunk), :],
                             preferred_element_type=jnp.float32)

    bias2 = jnp.broadcast_to(b2_ref[...], o_ref.shape).astype(jnp.float32)

    if unroll:
        acc = bias2
        for c in range(n_chunks):
            acc = chunk(c, acc)
        o_ref[...] = acc                              # single lane-dense store
    else:
        o_ref[...] = bias2

        @pl.loop(0, n_chunks)
        def _(c):
            o_ref[...] = chunk(c, o_ref[...])


# ----------------------------------------------------------------------------
# One-time parameter preparation (pad + bf16 cast, done outside the hot path)
# ----------------------------------------------------------------------------
def prepare_params(params, *, hid_chunk=256):
    w1, b1, w2, b2 = params
    f_in, hid = w1.shape
    f_out = w2.shape[1]

    hid_chunk = min(hid_chunk, _round_up(hid, 128))
    hid_p = _round_up(hid, hid_chunk)                 # multiple of hid_chunk
    f_out_p = _round_up(f_out, 128)                   # lane-dense output

    w1_p = jnp.pad(w1, ((0, 0), (0, hid_p - hid))).astype(jnp.bfloat16)
    b1_p = jnp.pad(jnp.reshape(b1, (1, hid)),
                   ((0, 0), (0, hid_p - hid))).astype(jnp.float32)
    w2_p = jnp.pad(w2, ((0, hid_p - hid), (0, f_out_p - f_out))
                   ).astype(jnp.bfloat16)
    b2_p = jnp.pad(jnp.reshape(b2, (1, f_out)),
                   ((0, 0), (0, f_out_p - f_out))).astype(jnp.float32)

    return dict(w1=w1_p, b1=b1_p, w2=w2_p, b2=b2_p,
                f_in=f_in, hid=hid, f_out=f_out,
                hid_p=hid_p, f_out_p=f_out_p, hid_chunk=hid_chunk)


def _tpu_vmem_capacity_bytes() -> int:
    try:
        return int(pltpu.get_tpu_info().vmem_capacity_bytes)
    except Exception:
        return 64 << 20   # conservative: assume v7x-sized VMEM


# ----------------------------------------------------------------------------
# Forward wrapper (== MLP.forward(x, edge_index) == nn(x))
# ----------------------------------------------------------------------------
def mlp_forward(x, edge_index, prep, *, tm=512):
    del edge_index  # unused, exactly as in the PyTorch module
    n, f_in = x.shape
    assert f_in == prep["f_in"]
    hid_p, f_out_p, hid_chunk = prep["hid_p"], prep["f_out_p"], prep["hid_chunk"]
    n_chunks = hid_p // hid_chunk

    vmem_cap = _tpu_vmem_capacity_bytes()
    vmem_budget = (vmem_cap * 3) // 4                 # ~96 MiB v5e/v6e, ~48 MiB v7x
    two_tc = vmem_cap <= (64 << 20)                   # v7x heuristic: 2 TCs/chip

    x_bytes = x.dtype.itemsize
    weights_bytes = ((f_in * hid_p + hid_p * f_out_p) * 2   # bf16, single-buffered
                     + (hid_p + f_out_p) * 4)                # f32 biases

    def vmem_est(tmv):
        return (2 * tmv * f_in * x_bytes              # x tiles (double-buffered)
                + weights_bytes                       # resident weights/biases
                + 2 * tmv * f_out_p * 4)              # out tiles f32 (2 bufs)

    # Row tile: either a multiple of 8 or the full row count (BlockSpec rule).
    tm_eff = n if n < tm else _round_up(tm, 8)
    while tm_eff >= 16 and vmem_est(tm_eff) > vmem_budget:
        tm_eff = max(8, _round_up(tm_eff // 2, 8))
    # TODO(synk): if the resident weights alone exceed the v7x VMEM budget
    # (very large hidden dims), stream W1/W2 chunks from HBM instead.

    if two_tc and n >= 4 * 128 and pl.cdiv(n, tm_eff) < 4:
        # Two TensorCores: target >= 2 grid steps per core when N allows.
        tm_eff = max(128, _round_up(pl.cdiv(n, 4), 8))

    grid = (pl.cdiv(n, tm_eff),)
    vmem_limit = int(min(max(vmem_est(tm_eff) * 3 // 2, 16 << 20), vmem_budget))

    flops = 2 * n * (f_in * hid_p + hid_p * f_out_p)
    bytes_accessed = n * f_in * x_bytes + weights_bytes + n * f_out_p * 4

    kernel = functools.partial(mlp_kernel, hid_chunk=hid_chunk,
                               n_chunks=n_chunks, unroll=n_chunks <= 8)

    def build(single_buffer_weights):
        mode = pl.Buffered(1) if single_buffer_weights else None

        def resident(shape):
            if mode is None:
                return pl.BlockSpec(shape, lambda i: (0, 0))
            return pl.BlockSpec(shape, lambda i: (0, 0), pipeline_mode=mode)

        return pl.pallas_call(
            kernel,
            out_shape=jax.ShapeDtypeStruct((n, f_out_p), jnp.float32),
            grid_spec=pltpu.PrefetchScalarGridSpec(
                num_scalar_prefetch=0,
                grid=grid,
                in_specs=[
                    pl.BlockSpec((tm_eff, f_in), lambda i: (i, 0)),  # x row tile
                    resident((f_in, hid_p)),                         # W1
                    resident((1, hid_p)),                            # b1
                    resident((hid_p, f_out_p)),                      # W2
                    resident((1, f_out_p)),                          # b2
                ],
                out_specs=pl.BlockSpec((tm_eff, f_out_p), lambda i: (i, 0))),
            compiler_params=pltpu.CompilerParams(
                dimension_semantics=("parallel",),
                vmem_limit_bytes=vmem_limit),
            cost_estimate=pl.CostEstimate(
                flops=flops, transcendentals=0, bytes_accessed=bytes_accessed),
        )

    args = (x, prep["w1"], prep["b1"], prep["w2"], prep["b2"])
    try:
        out_p = build(single_buffer_weights=True)(*args)
    except Exception:
        # Fallback: default double-buffering if single-buffering is rejected.
        out_p = build(single_buffer_weights=False)(*args)

    # Strip the lane-padding of the output feature dim (rows already exact).
    return out_p[:, :prep["f_out"]]


# ----------------------------------------------------------------------------
# Synthetic init / reference
# ----------------------------------------------------------------------------
def init_params(key, f_in, hid, f_out, dtype=jnp.float32):
    k1, k2, k3, k4 = jax.random.split(key, 4)
    w1 = jax.random.uniform(k1, (f_in, hid), dtype, -1.0, 1.0) / jnp.sqrt(f_in)
    b1 = jax.random.uniform(k2, (1, hid), dtype, -1.0, 1.0) / jnp.sqrt(f_in)
    w2 = jax.random.uniform(k3, (hid, f_out), dtype, -1.0, 1.0) / jnp.sqrt(hid)
    b2 = jax.random.uniform(k4, (1, f_out), dtype, -1.0, 1.0) / jnp.sqrt(hid)
    return w1, b1, w2, b2


def mlp_reference(x, params):
    """Pure-JAX reference mimicking the kernel's bf16-operand / f32-accumulate."""
    w1, b1, w2, b2 = params
    h = jnp.dot(x.astype(jnp.bfloat16), w1.astype(jnp.bfloat16),
                preferred_element_type=jnp.float32) + b1
    h = jnp.maximum(h, 0.0).astype(jnp.bfloat16)
    return jnp.dot(h, w2.astype(jnp.bfloat16),
                   preferred_element_type=jnp.float32) + b2


if __name__ == "__main__":
    key = jax.random.PRNGKey(0)
    kx, ke, kp = jax.random.split(key, 3)

    N, F_IN, HID, F_OUT = 128, 32, 64, 16
    x = jax.random.normal(kx, (N, F_IN), jnp.float32)
    # dummy edge_index (ignored by forward, exactly like the PyTorch module)
    edge_index = jax.random.randint(ke, (2, 256), 0, N, jnp.int32)
    params = init_params(kp, F_IN, HID, F_OUT)
    prep = prepare_params(params)          # one-time pad + bf16 cast of weights

    out = mlp_forward(x, edge_index, prep)
    out = jax.block_until_ready(out)

    ref = mlp_reference(x, params)
    assert out.shape == (N, F_OUT)
    assert jnp.allclose(out, ref, atol=2e-2, rtol=2e-2), "mismatch vs reference"

    print("KERNEL_OK")
</pallas_src>

<mosaic_0001>
module attributes {stable_mosaic.version = 11 : i64} {
  func.func @mlp_kernel(%arg0: i32, %arg1: memref<128x32xf32, #tpu.memory_space<vmem>>, %arg2: memref<32x128xbf16, #tpu.memory_space<vmem>>, %arg3: memref<1x128xf32, #tpu.memory_space<vmem>>, %arg4: memref<128x128xbf16, #tpu.memory_space<vmem>>, %arg5: memref<1x128xf32, #tpu.memory_space<vmem>>, %arg6: memref<128x128xf32, #tpu.memory_space<vmem>>) attributes {dimension_semantics = [#tpu.dimension_semantics<parallel>], iteration_bounds = array<i64: 1>, scalar_prefetch = 0 : i64, scratch_operands = 0 : i64, tpu.core_type = #tpu.core_type<tc>, window_params = [{transform_indices = @transform_0, window_bounds = array<i64: 128, 32>}, {pipeline_mode = #tpu.pipeline_mode<synchronous>, transform_indices = @transform_1, window_bounds = array<i64: 32, 128>}, {pipeline_mode = #tpu.pipeline_mode<synchronous>, transform_indices = @transform_2, window_bounds = array<i64: 1, 128>}, {pipeline_mode = #tpu.pipeline_mode<synchronous>, transform_indices = @transform_3, window_bounds = array<i64: 128, 128>}, {pipeline_mode = #tpu.pipeline_mode<synchronous>, transform_indices = @transform_4, window_bounds = array<i64: 1, 128>}, {transform_indices = @transform_5, window_bounds = array<i64: 128, 128>}]} {
    %c0 = arith.constant 0 : index
    %c0_0 = arith.constant 0 : index
    %0 = vector.load %arg1[%c0, %c0_0] : memref<128x32xf32, #tpu.memory_space<vmem>>, vector<128x32xf32>
    %1 = arith.truncf %0 : vector<128x32xf32> to vector<128x32xbf16>
    %c0_1 = arith.constant 0 : index
    %c0_2 = arith.constant 0 : index
    %2 = vector.load %arg5[%c0_1, %c0_2] : memref<1x128xf32, #tpu.memory_space<vmem>>, vector<1x128xf32>
    %3 = vector.shape_cast %2 : vector<1x128xf32> to vector<1x128xf32>
    %4 = vector.broadcast %3 : vector<1x128xf32> to vector<128x128xf32>
    %c0_3 = arith.constant 0 : index
    %c0_4 = arith.constant 0 : index
    %5 = vector.load %arg2[%c0_3, %c0_4] : memref<32x128xbf16, #tpu.memory_space<vmem>>, vector<32x128xbf16>
    %cst = arith.constant dense<0.000000e+00> : vector<128x128xf32>
    %6 = tpu.matmul %1, %5, %cst {dimension_numbers = #tpu.dot_dimension_numbers<[1], [0], [0], [1], [0, 0, 1, 1], [], []>} : vector<128x32xbf16>, vector<32x128xbf16>, vector<128x128xf32> -> vector<128x128xf32>
    %c0_5 = arith.constant 0 : index
    %c0_6 = arith.constant 0 : index
    %7 = vector.load %arg3[%c0_5, %c0_6] : memref<1x128xf32, #tpu.memory_space<vmem>>, vector<1x128xf32>
    %8 = vector.broadcast %7 : vector<1x128xf32> to vector<128x128xf32>
    %9 = arith.addf %6, %8 : vector<128x128xf32>
    %cst_7 = arith.constant 0.000000e+00 : f32
    %10 = vector.broadcast %cst_7 : f32 to vector<128x128xf32>
    %11 = arith.maximumf %9, %10 : vector<128x128xf32>
    %12 = arith.truncf %11 : vector<128x128xf32> to vector<128x128xbf16>
    %c0_8 = arith.constant 0 : index
    %c0_9 = arith.constant 0 : index
    %13 = vector.load %arg4[%c0_8, %c0_9] : memref<128x128xbf16, #tpu.memory_space<vmem>>, vector<128x128xbf16>
    %cst_10 = arith.constant dense<0.000000e+00> : vector<128x128xf32>
    %14 = tpu.matmul %12, %13, %cst_10 {dimension_numbers = #tpu.dot_dimension_numbers<[1], [0], [0], [1], [0, 0, 1, 1], [], []>} : vector<128x128xbf16>, vector<128x128xbf16>, vector<128x128xf32> -> vector<128x128xf32>
    %15 = arith.addf %4, %14 : vector<128x128xf32>
    %c0_11 = arith.constant 0 : index
    %c0_12 = arith.constant 0 : index
    %16 = vector.load %arg6[%c0_11, %c0_12] : memref<128x128xf32, #tpu.memory_space<vmem>>, vector<128x128xf32>
    tpu.vector_store %arg6[%c0_11, %c0_12], %15 {strides = array<i32>} : memref<128x128xf32, #tpu.memory_space<vmem>>, vector<128x128xf32>,
    return
  }
  func.func @transform_0(%arg0: i32) -> (i32, i32) {
    %c0_i32 = arith.constant 0 : i32
    %c0_i32_0 = arith.constant 0 : i32
    return %arg0, %c0_i32 : i32, i32
  }
  func.func @transform_1(%arg0: i32) -> (i32, i32) {
    %c0_i32 = arith.constant 0 : i32
    %c0_i32_0 = arith.constant 0 : i32
    %c0_i32_1 = arith.constant 0 : i32
    return %c0_i32, %c0_i32_0 : i32, i32
  }
  func.func @transform_2(%arg0: i32) -> (i32, i32) {
    %c0_i32 = arith.constant 0 : i32
    %c0_i32_0 = arith.constant 0 : i32
    %c0_i32_1 = arith.constant 0 : i32
    return %c0_i32, %c0_i32_0 : i32, i32
  }
  func.func @transform_3(%arg0: i32) -> (i32, i32) {
    %c0_i32 = arith.constant 0 : i32
    %c0_i32_0 = arith.constant 0 : i32
    %c0_i32_1 = arith.constant 0 : i32
    return %c0_i32, %c0_i32_0 : i32, i32
  }
  func.func @transform_4(%arg0: i32) -> (i32, i32) {
    %c0_i32 = arith.constant 0 : i32
    %c0_i32_0 = arith.constant 0 : i32
    %c0_i32_1 = arith.constant 0 : i32
    return %c0_i32, %c0_i32_0 : i32, i32
  }
  func.func @transform_5(%arg0: i32) -> (i32, i32) {
    %c0_i32 = arith.constant 0 : i32
    %c0_i32_0 = arith.constant 0 : i32
    return %arg0, %c0_i32 : i32, i32
  }
}

module attributes {stable_mosaic.version = 11 : i64} {
  func.func @mlp_kernel(%arg0: i32, %arg1: memref<128x32xf32, #tpu.memory_space<vmem>>, %arg2: memref<32x128xbf16, #tpu.memory_space<vmem>>, %arg3: memref<1x128xf32, #tpu.memory_space<vmem>>, %arg4: memref<128x128xbf16, #tpu.memory_space<vmem>>, %arg5: memref<1x128xf32, #tpu.memory_space<vmem>>, %arg6: memref<128x128xf32, #tpu.memory_space<vmem>>) attributes {dimension_semantics = [#tpu.dimension_semantics<parallel>], iteration_bounds = array<i64: 1>, scalar_prefetch = 0 : i64, scratch_operands = 0 : i64, tpu.core_type = #tpu.core_type<tc>, window_params = [{transform_indices = @transform_0, window_bounds = array<i64: 128, 32>}, {pipeline_mode = #tpu.pipeline_mode<synchronous>, transform_indices = @transform_1, window_bounds = array<i64: 32, 128>}, {pipeline_mode = #tpu.pipeline_mode<synchronous>, transform_indices = @transform_2, window_bounds = array<i64: 1, 128>}, {pipeline_mode = #tpu.pipeline_mode<synchronous>, transform_indices = @transform_3, window_bounds = array<i64: 128, 128>}, {pipeline_mode = #tpu.pipeline_mode<synchronous>, transform_indices = @transform_4, window_bounds = array<i64: 1, 128>}, {transform_indices = @transform_5, window_bounds = array<i64: 128, 128>}]} {
    %c0 = arith.constant 0 : index
    %c0_0 = arith.constant 0 : index
    %0 = vector.load %arg1[%c0, %c0_0] : memref<128x32xf32, #tpu.memory_space<vmem>>, vector<128x32xf32>
    %1 = arith.truncf %0 : vector<128x32xf32> to vector<128x32xbf16>
    %c0_1 = arith.constant 0 : index
    %c0_2 = arith.constant 0 : index
    %2 = vector.load %arg5[%c0_1, %c0_2] : memref<1x128xf32, #tpu.memory_space<vmem>>, vector<1x128xf32>
    %3 = vector.shape_cast %2 : vector<1x128xf32> to vector<1x128xf32>
    %4 = vector.broadcast %3 : vector<1x128xf32> to vector<128x128xf32>
    %c0_3 = arith.constant 0 : index
    %c0_4 = arith.constant 0 : index
    %5 = vector.load %arg2[%c0_3, %c0_4] : memref<32x128xbf16, #tpu.memory_space<vmem>>, vector<32x128xbf16>
    %cst = arith.constant dense<0.000000e+00> : vector<128x128xf32>
    %6 = tpu.matmul %1, %5, %cst {dimension_numbers = #tpu.dot_dimension_numbers<[1], [0], [0], [1], [0, 0, 1, 1], [], []>} : vector<128x32xbf16>, vector<32x128xbf16>, vector<128x128xf32> -> vector<128x128xf32>
    %c0_5 = arith.constant 0 : index
    %c0_6 = arith.constant 0 : index
    %7 = vector.load %arg3[%c0_5, %c0_6] : memref<1x128xf32, #tpu.memory_space<vmem>>, vector<1x128xf32>
    %8 = vector.broadcast %7 : vector<1x128xf32> to vector<128x128xf32>
    %9 = arith.addf %6, %8 : vector<128x128xf32>
    %cst_7 = arith.constant 0.000000e+00 : f32
    %10 = vector.broadcast %cst_7 : f32 to vector<128x128xf32>
    %11 = arith.maximumf %9, %10 : vector<128x128xf32>
    %12 = arith.truncf %11 : vector<128x128xf32> to vector<128x128xbf16>
    %c0_8 = arith.constant 0 : index
    %c0_9 = arith.constant 0 : index
    %13 = vector.load %arg4[%c0_8, %c0_9] : memref<128x128xbf16, #tpu.memory_space<vmem>>, vector<128x128xbf16>
    %cst_10 = arith.constant dense<0.000000e+00> : vector<128x128xf32>
    %14 = tpu.matmul %12, %13, %cst_10 {dimension_numbers = #tpu.dot_dimension_numbers<[1], [0], [0], [1], [0, 0, 1, 1], [], []>} : vector<128x128xbf16>, vector<128x128xbf16>, vector<128x128xf32> -> vector<128x128xf32>
    %15 = arith.addf %4, %14 : vector<128x128xf32>
    %c0_11 = arith.constant 0 : index
    %c0_12 = arith.constant 0 : index
    %16 = vector.load %arg6[%c0_11, %c0_12] : memref<128x128xf32, #tpu.memory_space<vmem>>, vector<128x128xf32>
    tpu.vector_store %arg6[%c0_11, %c0_12], %15 {strides = array<i32>} : memref<128x128xf32, #tpu.memory_space<vmem>>, vector<128x128xf32>,
    return
  }
  func.func @transform_0(%arg0: i32) -> (i32, i32) {
    %c0_i32 = arith.constant 0 : i32
    %c0_i32_0 = arith.constant 0 : i32
    return %arg0, %c0_i32 : i32, i32
  }
  func.func @transform_1(%arg0: i32) -> (i32, i32) {
    %c0_i32 = arith.constant 0 : i32
    %c0_i32_0 = arith.constant 0 : i32
    %c0_i32_1 = arith.constant 0 : i32
    return %c0_i32, %c0_i32_0 : i32, i32
  }
  func.func @transform_2(%arg0: i32) -> (i32, i32) {
    %c0_i32 = arith.constant 0 : i32
    %c0_i32_0 = arith.constant 0 : i32
    %c0_i32_1 = arith.constant 0 : i32
    return %c0_i32, %c0_i32_0 : i32, i32
  }
  func.func @transform_3(%arg0: i32) -> (i32, i32) {
    %c0_i32 = arith.constant 0 : i32
    %c0_i32_0 = arith.constant 0 : i32
    %c0_i32_1 = arith.constant 0 : i32
    return %c0_i32, %c0_i32_0 : i32, i32
  }
  func.func @transform_4(%arg0: i32) -> (i32, i32) {
    %c0_i32 = arith.constant 0 : i32
    %c0_i32_0 = arith.constant 0 : i32
    %c0_i32_1 = arith.constant 0 : i32
    return %c0_i32, %c0_i32_0 : i32, i32
  }
  func.func @transform_5(%arg0: i32) -> (i32, i32) {
    %c0_i32 = arith.constant 0 : i32
    %c0_i32_0 = arith.constant 0 : i32
    return %arg0, %c0_i32 : i32, i32
  }
}

</mosaic_0001>

<bundles_post_ra>
// kernel: tpu_custom_call.1
= control target key start
LH: loop header
LB: loop body
LE: loop exit
PB: predicated region body
PF: predicated region fallthrough
CT: control target
= control target key end

     0   :  { %vm76_vm0 = vcmask 261120   ;;  %s719_s0 = inlined_call_operand.vmem [shape: f32[128,32], index: 0, kind: input, shape index: {}]   ;;  %s720_s1 = inlined_call_operand.vmem [shape: bf16[32,128], index: 1, kind: input, shape index: {}]   ;;  %s721_s2 = inlined_call_operand.vmem [shape: f32[1,128], index: 2, kind: input, shape index: {}]   ;;  %s722_s3 = inlined_call_operand.vmem [shape: bf16[128,128], index: 3, kind: input, shape index: {}]   ;;  %s723_s4 = inlined_call_operand.vmem [shape: f32[1,128], index: 4, kind: input, shape index: {}]   ;;  %s724_s5 = inlined_call_operand.hbm [shape: f32[128,128], index: 5, kind: output, shape index: {}]  }
   0x1   :  { %v548_v0 = vld [vmem:[%s720_s1] sm:$0xff]   ;;  %v549_v1 = vld [vmem:[%s720_s1 + $0x8] sm:$0xff]   ;;  %v24_v5 = vld [vmem:[%s719_s0 + $0x10] sm:$0xff] }
   0x2   :  { %477 = vmatprep.subr.bf16.mxu0 %v548_v0  ;;  %v22_v2 = vld [vmem:[%s719_s0] sm:$0xff]  ;;  %v23_v3 = vld [vmem:[%s719_s0 + $0x8] sm:$0xff]  ;;  %v25_v6 = vld [vmem:[%s719_s0 + $0x18] sm:$0xff] }
   0x3   :  { %478 = vmatpush3.bf16.msra.mxu0 %v548_v0  ;;  %v38_v4 = vpack.c.bf16 %v23_v3, %v22_v2  ;;  %v26_v7 = vld [vmem:[%s719_s0 + $0x20] sm:$0xff]  ;;  %v27_v8 = vld [vmem:[%s719_s0 + $0x28] sm:$0xff]  ;;  %v39_v9 = vpack.c.bf16 %v25_v6, %v24_v5  ;;  %v28_v12 = vld [vmem:[%s719_s0 + $0x30] sm:$0xff] }
   0x4   :  { %479 = vmatprep.subr.bf16.mxu0 %v549_v1  ;;  %v40_v10 = vpack.c.bf16 %v27_v8, %v26_v7  ;;  %v550_v11 = vld [vmem:[%s722_s3] sm:$0xff]   ;;  %v29_v13 = vld [vmem:[%s719_s0 + $0x38] sm:$0xff]  ;;  %v551_v14 = vld [vmem:[%s722_s3 + $0x8] sm:$0xff]  }
   0x5   :  { %481 = vmatprep.mubr.msk.bf16.mxu0 %vm76_vm0, %v38_v4  ;;  %v30_v15 = vld [vmem:[%s719_s0 + $0x40] sm:$0xff]  ;;  %v31_v16 = vld [vmem:[%s719_s0 + $0x48] sm:$0xff]  ;;  %529 = vmatprep.subr.bf16.mxu1 %v550_v11  ;;  %v552_v17 = vld [vmem:[%s722_s3 + $0x10] sm:$0xff]   ;;  %v41_v18 = vpack.c.bf16 %v29_v13, %v28_v12 }
   0x6   :  { %537 = vmatpush3.bf16.msra.mxu1 %v550_v11 }
   0x7   :  { %480 = vmatpush3.bf16.msra.mxu0 %v549_v1  ;;  %530 = vmatprep.subr.bf16.mxu1 %v551_v14 }
   0x8   :  { %497 = vmatprep.subr.bf16.mxu0 %v550_v11 }
   0xa   :  { %482 = vmatmul.mubr.msk.bf16.vlgmr.msra.gmra.mrb[0].mxu0 %vm76_vm0, %v39_v9 }
   0xb   :  { %485 = vmatprep.mubr.msk.bf16.mxu0 %vm76_vm0, %v40_v10  ;;  %498 = vmatpush3.bf16.msra.mxu0 %v550_v11 }
   0xc   :  { %499 = vmatprep.subr.bf16.mxu0 %v551_v14 }
   0xd   :  { %10 = vsyncpa [#allocation3], 0  ;;  %v42_v19 = vpack.c.bf16 %v31_v16, %v30_v15  ;;  %v553_v20 = vld [vmem:[%s722_s3 + $0x18] sm:$0xff]   ;;  %538 = vmatpush3.bf16.msra.mxu1 %v551_v14  ;;  %v32_v21 = vld [vmem:[%s719_s0 + $0x50] sm:$0xff] }
   0xe   :  { %531 = vmatprep.subr.bf16.mxu1 %v552_v17  ;;  %v33_v22 = vld [vmem:[%s719_s0 + $0x58] sm:$0xff]  ;;  %v34_v23 = vld [vmem:[%s719_s0 + $0x60] sm:$0xff]  ;;  %v35_v24 = vld [vmem:[%s719_s0 + $0x68] sm:$0xff] }
   0xf   :  { %500 = vmatpush3.bf16.msra.mxu0 %v551_v14  ;;  %v554_v25 = vld [vmem:[%s722_s3 + $0x20] sm:$0xff]   ;;  %v43_v26 = vpack.c.bf16 %v33_v22, %v32_v21  ;;  %v44_v27 = vpack.c.bf16 %v35_v24, %v34_v23  ;;  %v555_v28 = vld [vmem:[%s722_s3 + $0x28] sm:$0xff]   ;;  %v36_v29 = vld [vmem:[%s719_s0 + $0x70] sm:$0xff] }
  0x10   :  { %501 = vmatprep.subr.bf16.mxu0 %v552_v17  ;;  %v37_v30 = vld [vmem:[%s719_s0 + $0x78] sm:$0xff]  ;;  %v556_v32 = vld [vmem:[%s722_s3 + $0x30] sm:$0xff]   ;;  %v432_v34 = vld [vmem:[%s721_s2] ss:$0 sm:$0xff] }
  0x11   :  { %539 = vmatpush3.bf16.msra.mxu1 %v552_v17  ;;  %v45_v31 = vpack.c.bf16 %v37_v30, %v36_v29  ;;  %v557_v33 = vld [vmem:[%s722_s3 + $0x38] sm:$0xff]  }
  0x12   :  { %486 = vmatmul.mubr.msk.bf16.gmra.mrb[4].mxu0 %vm76_vm0, %v41_v18  ;;  %532 = vmatprep.subr.bf16.mxu1 %v553_v20 }
  0x13   :  { %489 = vmatprep.mubr.msk.bf16.mxu0 %vm76_vm0, %v42_v19  ;;  %502 = vmatpush3.bf16.msra.mxu0 %v552_v17 }
  0x14   :  { %503 = vmatprep.subr.bf16.mxu0 %v553_v20 }
  0x15   :  { %540 = vmatpush3.bf16.msra.mxu1 %v553_v20 }
  0x16   :  { %533 = vmatprep.subr.bf16.mxu1 %v554_v25 }
  0x17   :  { %504 = vmatpush3.bf16.msra.mxu0 %v553_v20 }
  0x18   :  { %505 = vmatprep.subr.bf16.mxu0 %v554_v25 }
  0x19   :  { %541 = vmatpush3.bf16.msra.mxu1 %v554_v25 }
  0x1a   :  { %490 = vmatmul.mubr.msk.bf16.gmra.mrb[8].mxu0 %vm76_vm0, %v43_v26  ;;  %534 = vmatprep.subr.bf16.mxu1 %v555_v28 }
  0x1b   :  { %493 = vmatprep.mubr.msk.bf16.mxu0 %vm76_vm0, %v44_v27  ;;  %506 = vmatpush3.bf16.msra.mxu0 %v554_v25  ;;  %v431_v27 = vld [vmem:[%s723_s4] ss:$0 sm:$0xff]  ;;  %s582_s4 = smov [#allocation2]  }
  0x1c   :  { %507 = vmatprep.subr.bf16.mxu0 %v555_v28  ;;  %s420_s19 = sshll.u32 %s582_s4, 4  ;;  %s421_s19 = int_to_ptr.vmem [resolvable:$true] %s420_s19 }
  0x1d   :  { %542 = vmatpush3.bf16.msra.mxu1 %v555_v28  ;;  %s558_s20 = scalar_lea.vmem %s421_s19, 2048  ;;  %p563_p1 = scmp.lt.s32.totalorder %s421_s19, %s421_s19 }
  0x1e   :  { %535 = vmatprep.subr.bf16.mxu1 %v556_v32  ;;  %p559_p0 = scmp.ne.s32.totalorder %s421_s19, %s558_s20  ;;  %p564_p2 = scmp.lt.s32.totalorder %s558_s20, %s558_s20 }
  0x1f   :  { %508 = vmatpush3.bf16.msra.mxu0 %v555_v28 }
  0x20   :  { %509 = vmatprep.subr.bf16.mxu0 %v556_v32  ;;  %p565_p3 = por %p564_p2, %p563_p1 }
  0x21   :  { %543 = vmatpush3.bf16.msra.mxu1 %v556_v32 }
  0x22   :  { %494 = vmatmul.mubr.msk.bf16.gmra.mrb[12].mxu0 %vm76_vm0, %v45_v31  ;;  %536 = vmatprep.subr.bf16.mxu1 %v557_v33  ;;  %p566_p4 = pnand %p565_p3, %p559_p0 }
  0x23   :  { %510 = vmatpush3.bf16.msra.mxu0 %v556_v32 }
  0x24   :  { %511 = vmatprep.subr.bf16.mxu0 %v557_v33 }
  0x25   :  { %544 = vmatpush3.bf16.msra.mxu1 %v557_v33 }
  0x27   :  { %512 = vmatpush3.bf16.msra.mxu0 %v557_v33 }
  0xdd   :  { %v483_v35 = vpop.f32.mrb[0].mxu0 }
  0xde   :  { %v144_v36 = vadd.f32 %v483_v35, %v432_v34  ;;  %v135_v37 = vpop.f32.mrb[1].mxu0 }
  0xdf   :  { %v136_v38 = vadd.f32 %v432_v34, %v135_v37  ;;  %v484_v39 = vpop.f32.mrb[2].mxu0 }
  0xe0   :  { %v147_v40 = vadd.f32 %v484_v39, %v432_v34  ;;  %v138_v41 = vpop.f32.mrb[3].mxu0  ;;  %v200_v43 = vmax.f32 %v144_v36, 0.0 }
  0xe1   :  { %v139_v42 = vadd.f32 %v432_v34, %v138_v41  ;;  %v198_v45 = vmax.f32 %v136_v38, 0.0 }
  0xe2   :  { %v201_v44 = vmax.f32 %v147_v40, 0.0 }
  0xe3   :  { %v199_v46 = vmax.f32 %v139_v42, 0.0 }
  0xe4   :  { %v215_v47 = vpack.c.bf16 %v201_v44, %v200_v43 }
  0xe5   :  { %v214_v48 = vpack.c.bf16 %v199_v46, %v198_v45  ;;  %v487_v49 = vpop.f32.mrb[4].mxu0 }
  0xe6   :  { %v160_v50 = vadd.f32 %v487_v49, %v432_v34  ;;  %v151_v51 = vpop.f32.mrb[5].mxu0 }
  0xe7   :  { %v152_v52 = vadd.f32 %v432_v34, %v151_v51  ;;  %v488_v53 = vpop.f32.mrb[6].mxu0  ;;  %513 = vmatprep.mubr.bf16.mxu0 %v214_v48 }
  0xe8   :  { %v163_v54 = vadd.f32 %v488_v53, %v432_v34  ;;  %v154_v55 = vpop.f32.mrb[7].mxu0  ;;  %514 = vmatmul.mubr.bf16.vlgmr.msra.gmra.mrb[16].mxu0 %v215_v47  ;;  %v204_v57 = vmax.f32 %v160_v50, 0.0 }
  0xe9   :  { %v155_v56 = vadd.f32 %v432_v34, %v154_v55  ;;  %v202_v59 = vmax.f32 %v152_v52, 0.0 }
  0xea   :  { %v205_v58 = vmax.f32 %v163_v54, 0.0 }
  0xeb   :  { %v203_v60 = vmax.f32 %v155_v56, 0.0 }
  0xec   :  { %v217_v61 = vpack.c.bf16 %v205_v58, %v204_v57 }
  0xed   :  { %v491_v62 = vpop.f32.mrb[8].mxu0  ;;  %v216_v63 = vpack.c.bf16 %v203_v60, %v202_v59 }
  0xee   :  { %v176_v0 = vadd.f32 %v491_v62, %v432_v34  ;;  %v167_v1 = vpop.f32.mrb[9].mxu0 }
  0xef   :  { %v168_v2 = vadd.f32 %v432_v34, %v167_v1  ;;  %v492_v3 = vpop.f32.mrb[10].mxu0  ;;  %517 = vmatprep.mubr.bf16.mxu1 %v216_v63 }
  0xf0   :  { %v179_v4 = vadd.f32 %v492_v3, %v432_v34  ;;  %v170_v5 = vpop.f32.mrb[11].mxu0  ;;  %518 = vmatmul.mubr.bf16.vlgmr.msra.gmra.mrb[0].mxu1 %v217_v61  ;;  %v208_v7 = vmax.f32 %v176_v0, 0.0 }
  0xf1   :  { %v171_v6 = vadd.f32 %v432_v34, %v170_v5  ;;  %v206_v9 = vmax.f32 %v168_v2, 0.0 }
  0xf2   :  { %v209_v8 = vmax.f32 %v179_v4, 0.0 }
  0xf3   :  { %v207_v10 = vmax.f32 %v171_v6, 0.0 }
  0xf4   :  { %v219_v11 = vpack.c.bf16 %v209_v8, %v208_v7 }
  0xf5   :  { %v218_v12 = vpack.c.bf16 %v207_v10, %v206_v9  ;;  %v495_v13 = vpop.f32.mrb[12].mxu0 }
  0xf6   :  { %v192_v14 = vadd.f32 %v495_v13, %v432_v34  ;;  %v183_v15 = vpop.f32.mrb[13].mxu0 }
  0xf7   :  { %v184_v16 = vadd.f32 %v432_v34, %v183_v15  ;;  %v496_v17 = vpop.f32.mrb[14].mxu0  ;;  %521 = vmatprep.mubr.bf16.mxu1 %v218_v12 }
  0xf8   :  { %v195_v18 = vadd.f32 %v496_v17, %v432_v34  ;;  %v186_v19 = vpop.f32.mrb[15].mxu0  ;;  %522 = vmatmul.mubr.bf16.gmra.mrb[4].mxu1 %v219_v11  ;;  %v212_v21 = vmax.f32 %v192_v14, 0.0 }
  0xf9   :  { %v187_v20 = vadd.f32 %v432_v34, %v186_v19  ;;  %v210_v23 = vmax.f32 %v184_v16, 0.0 }
  0xfa   :  { %v213_v22 = vmax.f32 %v195_v18, 0.0 }
  0xfb   :  { %v211_v24 = vmax.f32 %v187_v20, 0.0 }
  0xfc   :  { %v221_v25 = vpack.c.bf16 %v213_v22, %v212_v21 }
  0xfd   :  { %v220_v26 = vpack.c.bf16 %v211_v24, %v210_v23 }
  0xff   :  { %525 = vmatprep.mubr.bf16.mxu1 %v220_v26 }
 0x100   :  { %526 = vmatmul.mubr.bf16.gmra.mrb[8].mxu1 %v221_v25 }
 0x1bb   :  { %v515_v28 = vpop.f32.mrb[16].mxu0 }
 0x1bc   :  { %v385_v29 = vadd.f32 %v515_v28, %v431_v27  ;;  %v320_v30 = vpop.f32.mrb[17].mxu0 }
 0x1bd   :  { %v383_v31 = vadd.f32 %v431_v27, %v320_v30  ;;  %v516_v32 = vpop.f32.mrb[18].mxu0 }
 0x1be   :  { %401 = vst [vmem:[#allocation2 + $0x10] sm:$0xff] %v385_v29  ;;  %v386_v33 = vadd.f32 %v516_v32, %v431_v27  ;;  %v323_v34 = vpop.f32.mrb[19].mxu0 }
 0x1bf   :  { %399 = vst [vmem:[#allocation2] sm:$0xff] %v383_v31  ;;  %v384_v35 = vadd.f32 %v431_v27, %v323_v34 }
 0x1c0   :  { %402 = vst [vmem:[#allocation2 + $0x18] sm:$0xff] %v386_v33 }
 0x1c1   :  { %400 = vst [vmem:[#allocation2 + $0x8] sm:$0xff] %v384_v35 }
 0x1c3   :  { %v519_v36 = vpop.f32.mrb[0].mxu1 }
 0x1c4   :  { %v389_v37 = vadd.f32 %v519_v36, %v431_v27  ;;  %v336_v38 = vpop.f32.mrb[1].mxu1 }
 0x1c5   :  { %v387_v39 = vadd.f32 %v431_v27, %v336_v38  ;;  %v520_v40 = vpop.f32.mrb[2].mxu1 }
 0x1c6   :  { %405 = vst [vmem:[#allocation2 + $0x30] sm:$0xff] %v389_v37  ;;  %v390_v41 = vadd.f32 %v520_v40, %v431_v27  ;;  %v339_v42 = vpop.f32.mrb[3].mxu1 }
 0x1c7   :  { %403 = vst [vmem:[#allocation2 + $0x20] sm:$0xff] %v387_v39  ;;  %v388_v43 = vadd.f32 %v431_v27, %v339_v42 }
 0x1c8   :  { %406 = vst [vmem:[#allocation2 + $0x38] sm:$0xff] %v390_v41 }
 0x1c9   :  { %404 = vst [vmem:[#allocation2 + $0x28] sm:$0xff] %v388_v43 }
 0x1cb   :  { %v523_v44 = vpop.f32.mrb[4].mxu1 }
 0x1cc   :  { %v393_v45 = vadd.f32 %v523_v44, %v431_v27  ;;  %v352_v46 = vpop.f32.mrb[5].mxu1 }
 0x1cd   :  { %v391_v47 = vadd.f32 %v431_v27, %v352_v46  ;;  %v524_v48 = vpop.f32.mrb[6].mxu1 }
 0x1ce   :  { %409 = vst [vmem:[#allocation2 + $0x50] sm:$0xff] %v393_v45  ;;  %v394_v49 = vadd.f32 %v524_v48, %v431_v27  ;;  %v355_v50 = vpop.f32.mrb[7].mxu1 }
 0x1cf   :  { %407 = vst [vmem:[#allocation2 + $0x40] sm:$0xff] %v391_v47  ;;  %v392_v51 = vadd.f32 %v431_v27, %v355_v50 }
 0x1d0   :  { %410 = vst [vmem:[#allocation2 + $0x58] sm:$0xff] %v394_v49 }
 0x1d1   :  { %408 = vst [vmem:[#allocation2 + $0x48] sm:$0xff] %v392_v51 }
 0x1d3   :  { %v527_v52 = vpop.f32.mrb[8].mxu1 }
 0x1d4   :  { %v397_v53 = vadd.f32 %v527_v52, %v431_v27  ;;  %v368_v54 = vpop.f32.mrb[9].mxu1 }
 0x1d5   :  { %v395_v55 = vadd.f32 %v431_v27, %v368_v54  ;;  %v528_v56 = vpop.f32.mrb[10].mxu1 }
 0x1d6   :  { %413 = vst [vmem:[#allocation2 + $0x70] sm:$0xff] %v397_v53  ;;  %v398_v57 = vadd.f32 %v528_v56, %v431_v27  ;;  %v371_v58 = vpop.f32.mrb[11].mxu1 }
 0x1d7   :  { %411 = vst [vmem:[#allocation2 + $0x60] sm:$0xff] %v395_v55  ;;  %v396_v59 = vadd.f32 %v431_v27, %v371_v58 }
 0x1d8   :  { %414 = vst [vmem:[#allocation2 + $0x78] sm:$0xff] %v398_v57 }
 0x1d9   :  { %412 = vst [vmem:[#allocation2 + $0x68] sm:$0xff] %v396_v59 }
 0x1da   :  { %569 = shalt.err (!%p566_p4)
}
 0x1db   :  { %s570_s23 = scalar_lea.hbm %s724_s5, 2048 }
 0x1dc   :  { %p571_p5 = scmp.ne.s32.totalorder %s724_s5, %s570_s23  ;;  %p574_p6 = scmp.lt.u32.totalorder %s570_s23, %s724_s5 }
 0x1de   :  { %p576_p7 = pnand %p574_p6, %p571_p5 }
 0x1e0   :  { %579 = shalt.err (!%p576_p7)
}
 0x1e1   :  { %s583_s28 = smov 128   ;;  %s584_s29 = smov 8  }
 0x1e2   :  { %426 = dma.vmem_to_hbm [thread:$0]  %s421_s19, 2048, %s724_s5, [#allocation3], %s583_s28, %s583_s28, %s584_s29  }
 0x1e3   :  { %580 = dma.done.wait [#allocation3], 2048  }
 0x1e4   :  { %581 = vsyncadd [#allocation3], 4294965248 }
 0x1e5   :  { %430 = vsyncpa [#allocation3], 1 }

// kernel: tpu_custom_call.1
= control target key start
LH: loop header
LB: loop body
LE: loop exit
PB: predicated region body
PF: predicated region fallthrough
CT: control target
= control target key end

     0   :  { %vm76_vm0 = vcmask 261120   ;;  %s719_s0 = inlined_call_operand.vmem [shape: f32[128,32], index: 0, kind: input, shape index: {}]   ;;  %s720_s1 = inlined_call_operand.vmem [shape: bf16[32,128], index: 1, kind: input, shape index: {}]   ;;  %s721_s2 = inlined_call_operand.vmem [shape: f32[1,128], index: 2, kind: input, shape index: {}]   ;;  %s722_s3 = inlined_call_operand.vmem [shape: bf16[128,128], index: 3, kind: input, shape index: {}]   ;;  %s723_s4 = inlined_call_operand.vmem [shape: f32[1,128], index: 4, kind: input, shape index: {}]   ;;  %s724_s5 = inlined_call_operand.hbm [shape: f32[128,128], index: 5, kind: output, shape index: {}]  }
   0x1   :  { %v548_v0 = vld [vmem:[%s720_s1] sm:$0xff]   ;;  %v549_v1 = vld [vmem:[%s720_s1 + $0x8] sm:$0xff]   ;;  %v24_v5 = vld [vmem:[%s719_s0 + $0x10] sm:$0xff] }
   0x2   :  { %477 = vmatprep.subr.bf16.mxu0 %v548_v0  ;;  %v22_v2 = vld [vmem:[%s719_s0] sm:$0xff]  ;;  %v23_v3 = vld [vmem:[%s719_s0 + $0x8] sm:$0xff]  ;;  %v25_v6 = vld [vmem:[%s719_s0 + $0x18] sm:$0xff] }
   0x3   :  { %478 = vmatpush3.bf16.msra.mxu0 %v548_v0  ;;  %v38_v4 = vpack.c.bf16 %v23_v3, %v22_v2  ;;  %v26_v7 = vld [vmem:[%s719_s0 + $0x20] sm:$0xff]  ;;  %v27_v8 = vld [vmem:[%s719_s0 + $0x28] sm:$0xff]  ;;  %v39_v9 = vpack.c.bf16 %v25_v6, %v24_v5  ;;  %v28_v12 = vld [vmem:[%s719_s0 + $0x30] sm:$0xff] }
   0x4   :  { %479 = vmatprep.subr.bf16.mxu0 %v549_v1  ;;  %v40_v10 = vpack.c.bf16 %v27_v8, %v26_v7  ;;  %v550_v11 = vld [vmem:[%s722_s3] sm:$0xff]   ;;  %v29_v13 = vld [vmem:[%s719_s0 + $0x38] sm:$0xff]  ;;  %v551_v14 = vld [vmem:[%s722_s3 + $0x8] sm:$0xff]  }
   0x5   :  { %481 = vmatprep.mubr.msk.bf16.mxu0 %vm76_vm0, %v38_v4  ;;  %v30_v15 = vld [vmem:[%s719_s0 + $0x40] sm:$0xff]  ;;  %v31_v16 = vld [vmem:[%s719_s0 + $0x48] sm:$0xff]  ;;  %529 = vmatprep.subr.bf16.mxu1 %v550_v11  ;;  %v552_v17 = vld [vmem:[%s722_s3 + $0x10] sm:$0xff]   ;;  %v41_v18 = vpack.c.bf16 %v29_v13, %v28_v12 }
   0x6   :  { %537 = vmatpush3.bf16.msra.mxu1 %v550_v11 }
   0x7   :  { %480 = vmatpush3.bf16.msra.mxu0 %v549_v1  ;;  %530 = vmatprep.subr.bf16.mxu1 %v551_v14 }
   0x8   :  { %497 = vmatprep.subr.bf16.mxu0 %v550_v11 }
   0xa   :  { %482 = vmatmul.mubr.msk.bf16.vlgmr.msra.gmra.mrb[0].mxu0 %vm76_vm0, %v39_v9 }
   0xb   :  { %485 = vmatprep.mubr.msk.bf16.mxu0 %vm76_vm0, %v40_v10  ;;  %498 = vmatpush3.bf16.msra.mxu0 %v550_v11 }
   0xc   :  { %499 = vmatprep.subr.bf16.mxu0 %v551_v14 }
   0xd   :  { %10 = vsyncpa [#allocation3], 0  ;;  %v42_v19 = vpack.c.bf16 %v31_v16, %v30_v15  ;;  %v553_v20 = vld [vmem:[%s722_s3 + $0x18] sm:$0xff]   ;;  %538 = vmatpush3.bf16.msra.mxu1 %v551_v14  ;;  %v32_v21 = vld [vmem:[%s719_s0 + $0x50] sm:$0xff] }
   0xe   :  { %531 = vmatprep.subr.bf16.mxu1 %v552_v17  ;;  %v33_v22 = vld [vmem:[%s719_s0 + $0x58] sm:$0xff]  ;;  %v34_v23 = vld [vmem:[%s719_s0 + $0x60] sm:$0xff]  ;;  %v35_v24 = vld [vmem:[%s719_s0 + $0x68] sm:$0xff] }
   0xf   :  { %500 = vmatpush3.bf16.msra.mxu0 %v551_v14  ;;  %v554_v25 = vld [vmem:[%s722_s3 + $0x20] sm:$0xff]   ;;  %v43_v26 = vpack.c.bf16 %v33_v22, %v32_v21  ;;  %v44_v27 = vpack.c.bf16 %v35_v24, %v34_v23  ;;  %v555_v28 = vld [vmem:[%s722_s3 + $0x28] sm:$0xff]   ;;  %v36_v29 = vld [vmem:[%s719_s0 + $0x70] sm:$0xff] }
  0x10   :  { %501 = vmatprep.subr.bf16.mxu0 %v552_v17  ;;  %v37_v30 = vld [vmem:[%s719_s0 + $0x78] sm:$0xff]  ;;  %v556_v32 = vld [vmem:[%s722_s3 + $0x30] sm:$0xff]   ;;  %v432_v34 = vld [vmem:[%s721_s2] ss:$0 sm:$0xff] }
  0x11   :  { %539 = vmatpush3.bf16.msra.mxu1 %v552_v17  ;;  %v45_v31 = vpack.c.bf16 %v37_v30, %v36_v29  ;;  %v557_v33 = vld [vmem:[%s722_s3 + $0x38] sm:$0xff]  }
  0x12   :  { %486 = vmatmul.mubr.msk.bf16.gmra.mrb[4].mxu0 %vm76_vm0, %v41_v18  ;;  %532 = vmatprep.subr.bf16.mxu1 %v553_v20 }
  0x13   :  { %489 = vmatprep.mubr.msk.bf16.mxu0 %vm76_vm0, %v42_v19  ;;  %502 = vmatpush3.bf16.msra.mxu0 %v552_v17 }
  0x14   :  { %503 = vmatprep.subr.bf16.mxu0 %v553_v20 }
  0x15   :  { %540 = vmatpush3.bf16.msra.mxu1 %v553_v20 }
  0x16   :  { %533 = vmatprep.subr.bf16.mxu1 %v554_v25 }
  0x17   :  { %504 = vmatpush3.bf16.msra.mxu0 %v553_v20 }
  0x18   :  { %505 = vmatprep.subr.bf16.mxu0 %v554_v25 }
  0x19   :  { %541 = vmatpush3.bf16.msra.mxu1 %v554_v25 }
  0x1a   :  { %490 = vmatmul.mubr.msk.bf16.gmra.mrb[8].mxu0 %vm76_vm0, %v43_v26  ;;  %534 = vmatprep.subr.bf16.mxu1 %v555_v28 }
  0x1b   :  { %493 = vmatprep.mubr.msk.bf16.mxu0 %vm76_vm0, %v44_v27  ;;  %506 = vmatpush3.bf16.msra.mxu0 %v554_v25  ;;  %v431_v27 = vld [vmem:[%s723_s4] ss:$0 sm:$0xff]  ;;  %s582_s4 = smov [#allocation2]  }
  0x1c   :  { %507 = vmatprep.subr.bf16.mxu0 %v555_v28  ;;  %s420_s19 = sshll.u32 %s582_s4, 4  ;;  %s421_s19 = int_to_ptr.vmem [resolvable:$true] %s420_s19 }
  0x1d   :  { %542 = vmatpush3.bf16.msra.mxu1 %v555_v28  ;;  %s558_s20 = scalar_lea.vmem %s421_s19, 2048  ;;  %p563_p1 = scmp.lt.s32.totalorder %s421_s19, %s421_s19 }
  0x1e   :  { %535 = vmatprep.subr.bf16.mxu1 %v556_v32  ;;  %p559_p0 = scmp.ne.s32.totalorder %s421_s19, %s558_s20  ;;  %p564_p2 = scmp.lt.s32.totalorder %s558_s20, %s558_s20 }
  0x1f   :  { %508 = vmatpush3.bf16.msra.mxu0 %v555_v28 }
  0x20   :  { %509 = vmatprep.subr.bf16.mxu0 %v556_v32  ;;  %p565_p3 = por %p564_p2, %p563_p1 }
  0x21   :  { %543 = vmatpush3.bf16.msra.mxu1 %v556_v32 }
  0x22   :  { %494 = vmatmul.mubr.msk.bf16.gmra.mrb[12].mxu0 %vm76_vm0, %v45_v31  ;;  %536 = vmatprep.subr.bf16.mxu1 %v557_v33  ;;  %p566_p4 = pnand %p565_p3, %p559_p0 }
  0x23   :  { %510 = vmatpush3.bf16.msra.mxu0 %v556_v32 }
  0x24   :  { %511 = vmatprep.subr.bf16.mxu0 %v557_v33 }
  0x25   :  { %544 = vmatpush3.bf16.msra.mxu1 %v557_v33 }
  0x27   :  { %512 = vmatpush3.bf16.msra.mxu0 %v557_v33 }
  0xdd   :  { %v483_v35 = vpop.f32.mrb[0].mxu0 }
  0xde   :  { %v144_v36 = vadd.f32 %v483_v35, %v432_v34  ;;  %v135_v37 = vpop.f32.mrb[1].mxu0 }
  0xdf   :  { %v136_v38 = vadd.f32 %v432_v34, %v135_v37  ;;  %v484_v39 = vpop.f32.mrb[2].mxu0 }
  0xe0   :  { %v147_v40 = vadd.f32 %v484_v39, %v432_v34  ;;  %v138_v41 = vpop.f32.mrb[3].mxu0  ;;  %v200_v43 = vmax.f32 %v144_v36, 0.0 }
  0xe1   :  { %v139_v42 = vadd.f32 %v432_v34, %v138_v41  ;;  %v198_v45 = vmax.f32 %v136_v38, 0.0 }
  0xe2   :  { %v201_v44 = vmax.f32 %v147_v40, 0.0 }
  0xe3   :  { %v199_v46 = vmax.f32 %v139_v42, 0.0 }
  0xe4   :  { %v215_v47 = vpack.c.bf16 %v201_v44, %v200_v43 }
  0xe5   :  { %v214_v48 = vpack.c.bf16 %v199_v46, %v198_v45  ;;  %v487_v49 = vpop.f32.mrb[4].mxu0 }
  0xe6   :  { %v160_v50 = vadd.f32 %v487_v49, %v432_v34  ;;  %v151_v51 = vpop.f32.mrb[5].mxu0 }
  0xe7   :  { %v152_v52 = vadd.f32 %v432_v34, %v151_v51  ;;  %v488_v53 = vpop.f32.mrb[6].mxu0  ;;  %513 = vmatprep.mubr.bf16.mxu0 %v214_v48 }
  0xe8   :  { %v163_v54 = vadd.f32 %v488_v53, %v432_v34  ;;  %v154_v55 = vpop.f32.mrb[7].mxu0  ;;  %514 = vmatmul.mubr.bf16.vlgmr.msra.gmra.mrb[16].mxu0 %v215_v47  ;;  %v204_v57 = vmax.f32 %v160_v50, 0.0 }
  0xe9   :  { %v155_v56 = vadd.f32 %v432_v34, %v154_v55  ;;  %v202_v59 = vmax.f32 %v152_v52, 0.0 }
  0xea   :  { %v205_v58 = vmax.f32 %v163_v54, 0.0 }
  0xeb   :  { %v203_v60 = vmax.f32 %v155_v56, 0.0 }
  0xec   :  { %v217_v61 = vpack.c.bf16 %v205_v58, %v204_v57 }
  0xed   :  { %v491_v62 = vpop.f32.mrb[8].mxu0  ;;  %v216_v63 = vpack.c.bf16 %v203_v60, %v202_v59 }
  0xee   :  { %v176_v0 = vadd.f32 %v491_v62, %v432_v34  ;;  %v167_v1 = vpop.f32.mrb[9].mxu0 }
  0xef   :  { %v168_v2 = vadd.f32 %v432_v34, %v167_v1  ;;  %v492_v3 = vpop.f32.mrb[10].mxu0  ;;  %517 = vmatprep.mubr.bf16.mxu1 %v216_v63 }
  0xf0   :  { %v179_v4 = vadd.f32 %v492_v3, %v432_v34  ;;  %v170_v5 = vpop.f32.mrb[11].mxu0  ;;  %518 = vmatmul.mubr.bf16.vlgmr.msra.gmra.mrb[0].mxu1 %v217_v61  ;;  %v208_v7 = vmax.f32 %v176_v0, 0.0 }
  0xf1   :  { %v171_v6 = vadd.f32 %v432_v34, %v170_v5  ;;  %v206_v9 = vmax.f32 %v168_v2, 0.0 }
  0xf2   :  { %v209_v8 = vmax.f32 %v179_v4, 0.0 }
  0xf3   :  { %v207_v10 = vmax.f32 %v171_v6, 0.0 }
  0xf4   :  { %v219_v11 = vpack.c.bf16 %v209_v8, %v208_v7 }
  0xf5   :  { %v218_v12 = vpack.c.bf16 %v207_v10, %v206_v9  ;;  %v495_v13 = vpop.f32.mrb[12].mxu0 }
  0xf6   :  { %v192_v14 = vadd.f32 %v495_v13, %v432_v34  ;;  %v183_v15 = vpop.f32.mrb[13].mxu0 }
  0xf7   :  { %v184_v16 = vadd.f32 %v432_v34, %v183_v15  ;;  %v496_v17 = vpop.f32.mrb[14].mxu0  ;;  %521 = vmatprep.mubr.bf16.mxu1 %v218_v12 }
  0xf8   :  { %v195_v18 = vadd.f32 %v496_v17, %v432_v34  ;;  %v186_v19 = vpop.f32.mrb[15].mxu0  ;;  %522 = vmatmul.mubr.bf16.gmra.mrb[4].mxu1 %v219_v11  ;;  %v212_v21 = vmax.f32 %v192_v14, 0.0 }
  0xf9   :  { %v187_v20 = vadd.f32 %v432_v34, %v186_v19  ;;  %v210_v23 = vmax.f32 %v184_v16, 0.0 }
  0xfa   :  { %v213_v22 = vmax.f32 %v195_v18, 0.0 }
  0xfb   :  { %v211_v24 = vmax.f32 %v187_v20, 0.0 }
  0xfc   :  { %v221_v25 = vpack.c.bf16 %v213_v22, %v212_v21 }
  0xfd   :  { %v220_v26 = vpack.c.bf16 %v211_v24, %v210_v23 }
  0xff   :  { %525 = vmatprep.mubr.bf16.mxu1 %v220_v26 }
 0x100   :  { %526 = vmatmul.mubr.bf16.gmra.mrb[8].mxu1 %v221_v25 }
 0x1bb   :  { %v515_v28 = vpop.f32.mrb[16].mxu0 }
 0x1bc   :  { %v385_v29 = vadd.f32 %v515_v28, %v431_v27  ;;  %v320_v30 = vpop.f32.mrb[17].mxu0 }
 0x1bd   :  { %v383_v31 = vadd.f32 %v431_v27, %v320_v30  ;;  %v516_v32 = vpop.f32.mrb[18].mxu0 }
 0x1be   :  { %401 = vst [vmem:[#allocation2 + $0x10] sm:$0xff] %v385_v29  ;;  %v386_v33 = vadd.f32 %v516_v32, %v431_v27  ;;  %v323_v34 = vpop.f32.mrb[19].mxu0 }
 0x1bf   :  { %399 = vst [vmem:[#allocation2] sm:$0xff] %v383_v31  ;;  %v384_v35 = vadd.f32 %v431_v27, %v323_v34 }
 0x1c0   :  { %402 = vst [vmem:[#allocation2 + $0x18] sm:$0xff] %v386_v33 }
 0x1c1   :  { %400 = vst [vmem:[#allocation2 + $0x8] sm:$0xff] %v384_v35 }
 0x1c3   :  { %v519_v36 = vpop.f32.mrb[0].mxu1 }
 0x1c4   :  { %v389_v37 = vadd.f32 %v519_v36, %v431_v27  ;;  %v336_v38 = vpop.f32.mrb[1].mxu1 }
 0x1c5   :  { %v387_v39 = vadd.f32 %v431_v27, %v336_v38  ;;  %v520_v40 = vpop.f32.mrb[2].mxu1 }
 0x1c6   :  { %405 = vst [vmem:[#allocation2 + $0x30] sm:$0xff] %v389_v37  ;;  %v390_v41 = vadd.f32 %v520_v40, %v431_v27  ;;  %v339_v42 = vpop.f32.mrb[3].mxu1 }
 0x1c7   :  { %403 = vst [vmem:[#allocation2 + $0x20] sm:$0xff] %v387_v39  ;;  %v388_v43 = vadd.f32 %v431_v27, %v339_v42 }
 0x1c8   :  { %406 = vst [vmem:[#allocation2 + $0x38] sm:$0xff] %v390_v41 }
 0x1c9   :  { %404 = vst [vmem:[#allocation2 + $0x28] sm:$0xff] %v388_v43 }
 0x1cb   :  { %v523_v44 = vpop.f32.mrb[4].mxu1 }
 0x1cc   :  { %v393_v45 = vadd.f32 %v523_v44, %v431_v27  ;;  %v352_v46 = vpop.f32.mrb[5].mxu1 }
 0x1cd   :  { %v391_v47 = vadd.f32 %v431_v27, %v352_v46  ;;  %v524_v48 = vpop.f32.mrb[6].mxu1 }
 0x1ce   :  { %409 = vst [vmem:[#allocation2 + $0x50] sm:$0xff] %v393_v45  ;;  %v394_v49 = vadd.f32 %v524_v48, %v431_v27  ;;  %v355_v50 = vpop.f32.mrb[7].mxu1 }
 0x1cf   :  { %407 = vst [vmem:[#allocation2 + $0x40] sm:$0xff] %v391_v47  ;;  %v392_v51 = vadd.f32 %v431_v27, %v355_v50 }
 0x1d0   :  { %410 = vst [vmem:[#allocation2 + $0x58] sm:$0xff] %v394_v49 }
 0x1d1   :  { %408 = vst [vmem:[#allocation2 + $0x48] sm:$0xff] %v392_v51 }
 0x1d3   :  { %v527_v52 = vpop.f32.mrb[8].mxu1 }
 0x1d4   :  { %v397_v53 = vadd.f32 %v527_v52, %v431_v27  ;;  %v368_v54 = vpop.f32.mrb[9].mxu1 }
 0x1d5   :  { %v395_v55 = vadd.f32 %v431_v27, %v368_v54  ;;  %v528_v56 = vpop.f32.mrb[10].mxu1 }
 0x1d6   :  { %413 = vst [vmem:[#allocation2 + $0x70] sm:$0xff] %v397_v53  ;;  %v398_v57 = vadd.f32 %v528_v56, %v431_v27  ;;  %v371_v58 = vpop.f32.mrb[11].mxu1 }
 0x1d7   :  { %411 = vst [vmem:[#allocation2 + $0x60] sm:$0xff] %v395_v55  ;;  %v396_v59 = vadd.f32 %v431_v27, %v371_v58 }
 0x1d8   :  { %414 = vst [vmem:[#allocation2 + $0x78] sm:$0xff] %v398_v57 }
 0x1d9   :  { %412 = vst [vmem:[#allocation2 + $0x68] sm:$0xff] %v396_v59 }
 0x1da   :  { %569 = shalt.err (!%p566_p4)
}
 0x1db   :  { %s570_s23 = scalar_lea.hbm %s724_s5, 2048 }
 0x1dc   :  { %p571_p5 = scmp.ne.s32.totalorder %s724_s5, %s570_s23  ;;  %p574_p6 = scmp.lt.u32.totalorder %s570_s23, %s724_s5 }
 0x1de   :  { %p576_p7 = pnand %p574_p6, %p571_p5 }
 0x1e0   :  { %579 = shalt.err (!%p576_p7)
}
 0x1e1   :  { %s583_s28 = smov 128   ;;  %s584_s29 = smov 8  }
 0x1e2   :  { %426 = dma.vmem_to_hbm [thread:$0]  %s421_s19, 2048, %s724_s5, [#allocation3], %s583_s28, %s583_s28, %s584_s29  }
 0x1e3   :  { %580 = dma.done.wait [#allocation3], 2048  }
 0x1e4   :  { %581 = vsyncadd [#allocation3], 4294965248 }
 0x1e5   :  { %430 = vsyncpa [#allocation3], 1 }

</bundles_post_ra>
